<compile_context>
chip_gen: v6e
topology: v6e:2x2x1
jax: 0.10.0
libtpu: 0.0.40
codegen_flags: <defaults>
</compile_context>

<pallas_src>
import jax
import jax.numpy as jnp
from jax.experimental import pallas as pl
from jax.experimental.pallas import tpu as pltpu


def dqn_kernel(x_ref, w1_ref, w2_ref, w3_ref, b12_ref, b3_ref, o_ref):
    # In-kernel bf16 cast of the f32 input tile (saves a wrapper cast pass).
    x = x_ref[...].astype(jnp.bfloat16)

    b1 = b12_ref[0:1, :]          # (1, 128) f32
    b2 = b12_ref[1:2, :]          # (1, 128) f32
    b3 = b3_ref[...]              # (1, action_size) f32

    # Layer 1: bf16 MXU matmul, f32 accumulate; bias + ReLU in f32 on the VPU.
    h1 = jnp.dot(x, w1_ref[...], preferred_element_type=jnp.float32)
    h1 = jnp.maximum(h1 + b1, 0.0)

    # Layer 2.
    h2 = jnp.dot(h1.astype(jnp.bfloat16), w2_ref[...],
                 preferred_element_type=jnp.float32)
    h2 = jnp.maximum(h2 + b2, 0.0)

    # Layer 3 (no activation); narrow (action_size) output column block.
    out = jnp.dot(h2.astype(jnp.bfloat16), w3_ref[...],
                  preferred_element_type=jnp.float32)
    o_ref[...] = (out + b3).astype(o_ref.dtype)


def _round_up(x, m):
    return ((x + m - 1) // m) * m


def prepare_dqn_params(w1, b1, w2, b2, w3, b3):
    """One-time parameter preparation (hoisted out of the per-call path)."""
    w1b = w1.astype(jnp.bfloat16)                       # (state, 128)
    w2b = w2.astype(jnp.bfloat16)                       # (128, 128)
    w3b = w3.astype(jnp.bfloat16)                       # (128, action)
    b12 = jnp.stack([b1.reshape(-1), b2.reshape(-1)], axis=0).astype(jnp.float32)
    b3r = b3.reshape(1, -1).astype(jnp.float32)         # (1, action)
    return (w1b, w2b, w3b, b12, b3r)


_PAD_QUANTUM = 128  # batch padding quantum, decoupled from the tile size


def _pick_tile(b_padded, tile_b):
    """Largest row tile <= tile_b that divides the padded batch; prefer >=2 grid
    steps (v7x has 2 TensorCores sharing the 'parallel' batch axis)."""
    k = b_padded // _PAD_QUANTUM
    max_d = max(1, tile_b // _PAD_QUANTUM)
    if k >= 2:
        max_d = min(max_d, max(1, k // 2))
    max_d = min(max_d, k)
    for d in range(max_d, 0, -1):
        if k % d == 0:
            return _PAD_QUANTUM * d
    return _PAD_QUANTUM


def dqn_forward(x, params, *, tile_b=4096):
    """x: (batch, state_size) f32.  params: output of prepare_dqn_params."""
    w1b, w2b, w3b, b12, b3r = params
    batch, state_size = x.shape
    hidden = w1b.shape[1]
    action_size = w3b.shape[1]

    # Pad batch to a small quantum (not to a full tile).
    b_padded = _round_up(batch, _PAD_QUANTUM)
    if b_padded != batch:
        x = jnp.pad(x, ((0, b_padded - batch), (0, 0)))
    tb = _pick_tile(b_padded, tile_b)
    grid = (b_padded // tb,)

    # Advisory cost estimate so XLA schedules surrounding ops sensibly.
    flops = 2 * b_padded * (state_size * hidden + hidden * hidden
                            + hidden * action_size)
    bytes_accessed = (
        b_padded * state_size * 4                      # x read (f32)
        + b_padded * action_size * 4                   # out write (f32)
        + (w1b.size + w2b.size + w3b.size) * 2         # bf16 weights
        + (b12.size + b3r.size) * 4)                   # f32 biases
    cost = pl.CostEstimate(flops=flops, transcendentals=0,
                           bytes_accessed=bytes_accessed)

    out = pl.pallas_call(
        dqn_kernel,
        out_shape=jax.ShapeDtypeStruct((b_padded, action_size), jnp.float32),
        grid=grid,
        in_specs=[
            pl.BlockSpec((tb, state_size), lambda i: (i, 0)),       # x: tiled over batch
            pl.BlockSpec((state_size, hidden), lambda i: (0, 0)),   # w1: VMEM-resident
            pl.BlockSpec((hidden, hidden), lambda i: (0, 0)),       # w2: VMEM-resident
            pl.BlockSpec((hidden, action_size), lambda i: (0, 0)),  # w3: VMEM-resident
            pl.BlockSpec((2, hidden), lambda i: (0, 0)),            # b1/b2 stacked: resident
            pl.BlockSpec((1, action_size), lambda i: (0, 0)),       # b3: resident
        ],
        out_specs=pl.BlockSpec((tb, action_size), lambda i: (i, 0)),
        compiler_params=pltpu.CompilerParams(
            dimension_semantics=("parallel",)),
        cost_estimate=cost,
    )(x, w1b, w2b, w3b, b12, b3r)

    if b_padded != batch:
        out = out[:batch]
    return out


def init_linear_params(key, in_features, out_features):
    # Deterministic init mimicking PyTorch nn.Linear default: U(-1/sqrt(in), 1/sqrt(in)).
    kw, kb = jax.random.split(key)
    bound = 1.0 / (in_features ** 0.5)
    w = jax.random.uniform(kw, (in_features, out_features), jnp.float32, -bound, bound)
    b = jax.random.uniform(kb, (out_features,), jnp.float32, -bound, bound)
    return w, b


if __name__ == "__main__":
    state_size = 16
    action_size = 8
    batch = 2
    hidden = 128

    key = jax.random.PRNGKey(0)
    k_x, k1, k2, k3 = jax.random.split(key, 4)

    x = jax.random.normal(k_x, (batch, state_size), jnp.float32)
    w1, b1 = init_linear_params(k1, state_size, hidden)
    w2, b2 = init_linear_params(k2, hidden, hidden)
    w3, b3 = init_linear_params(k3, hidden, action_size)

    params = prepare_dqn_params(w1, b1, w2, b2, w3, b3)  # one-time prep
    out = dqn_forward(x, params)
    out = jax.block_until_ready(out)

    # Pure-JAX f32 reference of the PyTorch forward.
    ref = jnp.maximum(x @ w1 + b1, 0.0)
    ref = jnp.maximum(ref @ w2 + b2, 0.0)
    ref = ref @ w3 + b3

    assert out.shape == (batch, action_size)
    # bf16 MXU operands -> relaxed tolerance vs the f32 reference.
    assert jnp.allclose(out, ref, atol=5e-2, rtol=5e-2), float(
        jnp.max(jnp.abs(out - ref)))

    print("KERNEL_OK")
</pallas_src>

<mosaic_0001>
module attributes {stable_mosaic.version = 11 : i64} {
  func.func @dqn_kernel(%arg0: i32, %arg1: memref<128x16xf32, #tpu.memory_space<vmem>>, %arg2: memref<16x128xbf16, #tpu.memory_space<vmem>>, %arg3: memref<128x128xbf16, #tpu.memory_space<vmem>>, %arg4: memref<128x8xbf16, #tpu.memory_space<vmem>>, %arg5: memref<2x128xf32, #tpu.memory_space<vmem>>, %arg6: memref<1x8xf32, #tpu.memory_space<vmem>>, %arg7: memref<128x8xf32, #tpu.memory_space<vmem>>) attributes {dimension_semantics = [#tpu.dimension_semantics<parallel>], iteration_bounds = array<i64: 1>, scalar_prefetch = 0 : i64, scratch_operands = 0 : i64, tpu.core_type = #tpu.core_type<tc>, window_params = [{transform_indices = @transform_0, window_bounds = array<i64: 128, 16>}, {pipeline_mode = #tpu.pipeline_mode<synchronous>, transform_indices = @transform_1, window_bounds = array<i64: 16, 128>}, {pipeline_mode = #tpu.pipeline_mode<synchronous>, transform_indices = @transform_2, window_bounds = array<i64: 128, 128>}, {pipeline_mode = #tpu.pipeline_mode<synchronous>, transform_indices = @transform_3, window_bounds = array<i64: 128, 8>}, {pipeline_mode = #tpu.pipeline_mode<synchronous>, transform_indices = @transform_4, window_bounds = array<i64: 2, 128>}, {pipeline_mode = #tpu.pipeline_mode<synchronous>, transform_indices = @transform_5, window_bounds = array<i64: 1, 8>}, {transform_indices = @transform_6, window_bounds = array<i64: 128, 8>}]} {
    %c0 = arith.constant 0 : index
    %c0_0 = arith.constant 0 : index
    %0 = vector.load %arg1[%c0, %c0_0] : memref<128x16xf32, #tpu.memory_space<vmem>>, vector<128x16xf32>
    %1 = arith.truncf %0 : vector<128x16xf32> to vector<128x16xbf16>
    %c0_1 = arith.constant 0 : index
    %c0_2 = arith.constant 0 : index
    %2 = vector.load %arg5[%c0_1, %c0_2] : memref<2x128xf32, #tpu.memory_space<vmem>>, vector<1x128xf32>
    %c1 = arith.constant 1 : index
    %c0_3 = arith.constant 0 : index
    %3 = vector.load %arg5[%c1, %c0_3] : memref<2x128xf32, #tpu.memory_space<vmem>>, vector<1x128xf32>
    %c0_4 = arith.constant 0 : index
    %c0_5 = arith.constant 0 : index
    %4 = vector.load %arg6[%c0_4, %c0_5] : memref<1x8xf32, #tpu.memory_space<vmem>>, vector<1x8xf32>
    %c0_6 = arith.constant 0 : index
    %c0_7 = arith.constant 0 : index
    %5 = vector.load %arg2[%c0_6, %c0_7] : memref<16x128xbf16, #tpu.memory_space<vmem>>, vector<16x128xbf16>
    %cst = arith.constant dense<0.000000e+00> : vector<128x128xf32>
    %6 = tpu.matmul %1, %5, %cst {dimension_numbers = #tpu.dot_dimension_numbers<[1], [0], [0], [1], [0, 0, 1, 1], [], []>} : vector<128x16xbf16>, vector<16x128xbf16>, vector<128x128xf32> -> vector<128x128xf32>
    %7 = vector.broadcast %2 : vector<1x128xf32> to vector<128x128xf32>
    %8 = arith.addf %6, %7 : vector<128x128xf32>
    %cst_8 = arith.constant 0.000000e+00 : f32
    %9 = vector.broadcast %cst_8 : f32 to vector<128x128xf32>
    %10 = arith.maximumf %8, %9 : vector<128x128xf32>
    %11 = arith.truncf %10 : vector<128x128xf32> to vector<128x128xbf16>
    %c0_9 = arith.constant 0 : index
    %c0_10 = arith.constant 0 : index
    %12 = vector.load %arg3[%c0_9, %c0_10] : memref<128x128xbf16, #tpu.memory_space<vmem>>, vector<128x128xbf16>
    %cst_11 = arith.constant dense<0.000000e+00> : vector<128x128xf32>
    %13 = tpu.matmul %11, %12, %cst_11 {dimension_numbers = #tpu.dot_dimension_numbers<[1], [0], [0], [1], [0, 0, 1, 1], [], []>} : vector<128x128xbf16>, vector<128x128xbf16>, vector<128x128xf32> -> vector<128x128xf32>
    %14 = vector.broadcast %3 : vector<1x128xf32> to vector<128x128xf32>
    %15 = arith.addf %13, %14 : vector<128x128xf32>
    %cst_12 = arith.constant 0.000000e+00 : f32
    %16 = vector.broadcast %cst_12 : f32 to vector<128x128xf32>
    %17 = arith.maximumf %15, %16 : vector<128x128xf32>
    %18 = arith.truncf %17 : vector<128x128xf32> to vector<128x128xbf16>
    %c0_13 = arith.constant 0 : index
    %c0_14 = arith.constant 0 : index
    %19 = vector.load %arg4[%c0_13, %c0_14] : memref<128x8xbf16, #tpu.memory_space<vmem>>, vector<128x8xbf16>
    %cst_15 = arith.constant dense<0.000000e+00> : vector<128x8xf32>
    %20 = tpu.matmul %18, %19, %cst_15 {dimension_numbers = #tpu.dot_dimension_numbers<[1], [0], [0], [1], [0, 0, 1, 1], [], []>} : vector<128x128xbf16>, vector<128x8xbf16>, vector<128x8xf32> -> vector<128x8xf32>
    %21 = vector.broadcast %4 : vector<1x8xf32> to vector<128x8xf32>
    %22 = arith.addf %20, %21 : vector<128x8xf32>
    %c0_16 = arith.constant 0 : index
    %c0_17 = arith.constant 0 : index
    %23 = vector.load %arg7[%c0_16, %c0_17] : memref<128x8xf32, #tpu.memory_space<vmem>>, vector<128x8xf32>
    tpu.vector_store %arg7[%c0_16, %c0_17], %22 {strides = array<i32>} : memref<128x8xf32, #tpu.memory_space<vmem>>, vector<128x8xf32>,
    return
  }
  func.func @transform_0(%arg0: i32) -> (i32, i32) {
    %c0_i32 = arith.constant 0 : i32
    %c0_i32_0 = arith.constant 0 : i32
    return %arg0, %c0_i32 : i32, i32
  }
  func.func @transform_1(%arg0: i32) -> (i32, i32) {
    %c0_i32 = arith.constant 0 : i32
    %c0_i32_0 = arith.constant 0 : i32
    %c0_i32_1 = arith.constant 0 : i32
    return %c0_i32, %c0_i32_0 : i32, i32
  }
  func.func @transform_2(%arg0: i32) -> (i32, i32) {
    %c0_i32 = arith.constant 0 : i32
    %c0_i32_0 = arith.constant 0 : i32
    %c0_i32_1 = arith.constant 0 : i32
    return %c0_i32, %c0_i32_0 : i32, i32
  }
  func.func @transform_3(%arg0: i32) -> (i32, i32) {
    %c0_i32 = arith.constant 0 : i32
    %c0_i32_0 = arith.constant 0 : i32
    %c0_i32_1 = arith.constant 0 : i32
    return %c0_i32, %c0_i32_0 : i32, i32
  }
  func.func @transform_4(%arg0: i32) -> (i32, i32) {
    %c0_i32 = arith.constant 0 : i32
    %c0_i32_0 = arith.constant 0 : i32
    %c0_i32_1 = arith.constant 0 : i32
    return %c0_i32, %c0_i32_0 : i32, i32
  }
  func.func @transform_5(%arg0: i32) -> (i32, i32) {
    %c0_i32 = arith.constant 0 : i32
    %c0_i32_0 = arith.constant 0 : i32
    %c0_i32_1 = arith.constant 0 : i32
    return %c0_i32, %c0_i32_0 : i32, i32
  }
  func.func @transform_6(%arg0: i32) -> (i32, i32) {
    %c0_i32 = arith.constant 0 : i32
    %c0_i32_0 = arith.constant 0 : i32
    return %arg0, %c0_i32 : i32, i32
  }
}

</mosaic_0001>

<bundles_post_ra>
// kernel: tpu_custom_call.1
= control target key start
LH: loop header
LB: loop body
LE: loop exit
PB: predicated region body
PF: predicated region fallthrough
CT: control target
= control target key end

     0   :  { %vm63_vm0 = vcmask 130048   ;;  %vm565_vm1 = vcmask 64512   ;;  %s969_s1 = inlined_call_operand.vmem [shape: bf16[16,128], index: 1, kind: input, shape index: {}]   ;;  %s970_s0 = inlined_call_operand.vmem [shape: f32[128,16], index: 0, kind: input, shape index: {}]   ;;  %s971_s2 = inlined_call_operand.vmem [shape: bf16[128,128], index: 2, kind: input, shape index: {}]   ;;  %s972_s3 = inlined_call_operand.vmem [shape: bf16[128,8], index: 3, kind: input, shape index: {}]   ;;  %s973_s4 = inlined_call_operand.vmem [shape: f32[2,128], index: 4, kind: input, shape index: {}]   ;;  %s974_s5 = inlined_call_operand.vmem [shape: f32[1,8], index: 5, kind: input, shape index: {}]   ;;  %s975_s6 = inlined_call_operand.vmem [shape: f32[128,8], index: 6, kind: output, shape index: {}]  }
   0x1   :  { %v737_v0 = vld [vmem:[%s969_s1] sm:$0xff]   ;;  %v25_v2 = vld [vmem:[%s970_s0 + $0x8] sm:$0xff]  ;;  %v26_v3 = vld [vmem:[%s970_s0 + $0x10] sm:$0xff] }
   0x2   :  { %v24_v1 = vld [vmem:[%s970_s0] sm:$0xff]  ;;  %655 = vmatprep.subr.bf16.mxu0 %v737_v0  ;;  %v27_v5 = vld [vmem:[%s970_s0 + $0x18] sm:$0xff]  ;;  %v29_v7 = vld [vmem:[%s970_s0 + $0x28] sm:$0xff] }
   0x3   :  { %v40_v4 = vpack.c.bf16 %v25_v2, %v24_v1  ;;  %v28_v6 = vld [vmem:[%s970_s0 + $0x20] sm:$0xff]  ;;  %656 = vmatpush3.bf16.msra.mxu0 %v737_v0  ;;  %v41_v8 = vpack.c.bf16 %v27_v5, %v26_v3  ;;  %v30_v10 = vld [vmem:[%s970_s0 + $0x30] sm:$0xff]  ;;  %v31_v11 = vld [vmem:[%s970_s0 + $0x38] sm:$0xff] }
   0x4   :  { %v42_v9 = vpack.c.bf16 %v29_v7, %v28_v6  ;;  %v32_v12 = vld [vmem:[%s970_s0 + $0x40] sm:$0xff]  ;;  %v33_v13 = vld [vmem:[%s970_s0 + $0x48] sm:$0xff]  ;;  %v738_v14 = vld [vmem:[%s971_s2 + $0x38] sm:$0xff]   ;;  %v43_v16 = vpack.c.bf16 %v31_v11, %v30_v10 }
   0x5   :  { %657 = vmatprep.mubr.msk.bf16.mxu0 %vm63_vm0, %v40_v4  ;;  %v739_v15 = vld [vmem:[%s971_s2 + $0x30] sm:$0xff]   ;;  %673 = vmatprep.subr.bf16.mxu1 %v738_v14  ;;  %v44_v17 = vpack.c.bf16 %v33_v13, %v32_v12  ;;  %v740_v18 = vld [vmem:[%s971_s2 + $0x28] sm:$0xff]   ;;  %v35_v20 = vld [vmem:[%s970_s0 + $0x58] sm:$0xff] }
   0x6   :  { %658 = vmatmul.mubr.msk.bf16.vlgmr.msra.gmra.mxu0 %vm63_vm0, %v41_v8  ;;  %674 = vmatpush3.bf16.msra.mxu1 %v738_v14  ;;  %v34_v19 = vld [vmem:[%s970_s0 + $0x50] sm:$0xff]  ;;  %v741_v21 = vld [vmem:[%s971_s2 + $0x20] sm:$0xff]   ;;  %v37_v23 = vld [vmem:[%s970_s0 + $0x68] sm:$0xff] }
   0x7   :  { %661 = vmatprep.mubr.msk.bf16.mxu0 %vm63_vm0, %v42_v9  ;;  %675 = vmatprep.subr.bf16.mxu1 %v739_v15  ;;  %v36_v22 = vld [vmem:[%s970_s0 + $0x60] sm:$0xff]  ;;  %v45_v24 = vpack.c.bf16 %v35_v20, %v34_v19  ;;  %v742_v26 = vld [vmem:[%s971_s2 + $0x18] sm:$0xff]   ;;  %v38_v27 = vld [vmem:[%s970_s0 + $0x70] sm:$0xff] }
   0x8   :  { %v46_v25 = vpack.c.bf16 %v37_v23, %v36_v22  ;;  %v39_v28 = vld [vmem:[%s970_s0 + $0x78] sm:$0xff]  ;;  %v743_v30 = vld [vmem:[%s971_s2 + $0x10] sm:$0xff]   ;;  %v744_v31 = vld [vmem:[%s971_s2 + $0x8] sm:$0xff]  }
   0x9   :  { %v47_v29 = vpack.c.bf16 %v39_v28, %v38_v27  ;;  %v745_v32 = vld [vmem:[%s971_s2] sm:$0xff]   ;;  %v746_v33 = vld [vmem:[%s972_s3 + $0x38] sm:$0xff]   ;;  %v747_v34 = vld [vmem:[%s972_s3 + $0x30] sm:$0xff]  }
   0xa   :  { %676 = vmatpush3.bf16.msra.mxu1 %v739_v15  ;;  %705 = vmatprep.subr.bf16.mxu0 %v746_v33  ;;  %v748_v35 = vld [vmem:[%s972_s3 + $0x28] sm:$0xff]   ;;  %v749_v36 = vld [vmem:[%s972_s3 + $0x20] sm:$0xff]   ;;  %v750_v37 = vld [vmem:[%s972_s3 + $0x18] sm:$0xff]  }
   0xb   :  { %677 = vmatprep.subr.bf16.mxu1 %v740_v18  ;;  %706 = vmatpush3.bf16.msra.mxu0 %v746_v33  ;;  %v586_v40 = vld [vmem:[%s973_s4] ss:$0 sm:$0xff] }
   0xc   :  { %707 = vmatprep.subr.bf16.mxu0 %v747_v34  ;;  %v753_v33 = vld [vmem:[%s972_s3] sm:$0xff]  }
   0xe   :  { %662 = vmatmul.mubr.msk.bf16.gmra.mxu0 %vm63_vm0, %v43_v16  ;;  %678 = vmatpush3.bf16.msra.mxu1 %v740_v18 }
   0xf   :  { %665 = vmatprep.mubr.msk.bf16.mxu0 %vm63_vm0, %v44_v17  ;;  %679 = vmatprep.subr.bf16.mxu1 %v741_v21 }
  0x10   :  { %708 = vmatpush3.bf16.msra.mxu0 %v747_v34 }
  0x11   :  { %709 = vmatprep.subr.bf16.mxu0 %v748_v35 }
  0x12   :  { %680 = vmatpush3.bf16.msra.mxu1 %v741_v21 }
  0x13   :  { %681 = vmatprep.subr.bf16.mxu1 %v742_v26 }
  0x14   :  { %710 = vmatpush3.bf16.msra.mxu0 %v748_v35 }
  0x15   :  { %711 = vmatprep.subr.bf16.mxu0 %v749_v36 }
  0x16   :  { %666 = vmatmul.mubr.msk.bf16.gmra.mxu0 %vm63_vm0, %v45_v24  ;;  %682 = vmatpush3.bf16.msra.mxu1 %v742_v26 }
  0x17   :  { %669 = vmatprep.mubr.msk.bf16.mxu0 %vm63_vm0, %v46_v25  ;;  %683 = vmatprep.subr.bf16.mxu1 %v743_v30 }
  0x18   :  { %712 = vmatpush3.bf16.msra.mxu0 %v749_v36  ;;  %v596_v36 = vld [vmem:[%s973_s4 + $0x1] ss:$0 sm:$0xff] }
  0x19   :  { %713 = vmatprep.subr.bf16.mxu0 %v750_v37 }
  0x1a   :  { %684 = vmatpush3.bf16.msra.mxu1 %v743_v30 }
  0x1b   :  { %685 = vmatprep.subr.bf16.mxu1 %v744_v31 }
  0x1c   :  { %714 = vmatpush3.bf16.msra.mxu0 %v750_v37 }
  0x1e   :  { %670 = vmatmul.mubr.msk.bf16.gmra.mxu0 %vm63_vm0, %v47_v29  ;;  %686 = vmatpush3.bf16.msra.mxu1 %v744_v31  ;;  %v751_v31 = vld [vmem:[%s972_s3 + $0x10] sm:$0xff]  }
  0x1f   :  { %687 = vmatprep.subr.bf16.mxu1 %v745_v32  ;;  %715 = vmatprep.subr.bf16.mxu0 %v751_v31 }
  0x20   :  { %716 = vmatpush3.bf16.msra.mxu0 %v751_v31 }
  0x22   :  { %688 = vmatpush3.bf16.msra.mxu1 %v745_v32  ;;  %v752_v32 = vld [vmem:[%s972_s3 + $0x8] sm:$0xff]  }
  0x23   :  { %717 = vmatprep.subr.bf16.mxu0 %v752_v32 }
  0x24   :  { %718 = vmatpush3.bf16.msra.mxu0 %v752_v32 }
  0x25   :  { %719 = vmatprep.subr.bf16.mxu0 %v753_v33 }
  0x28   :  { %720 = vmatpush3.bf16.msra.mxu0 %v753_v33 }
  0xc6   :  { %v659_v38 = vpop.f32.mrf.mxu0 }
  0xc7   :  { %v131_v44 = vadd.f32 %v659_v38, %v586_v40 }
  0xc8   :  { %v122_v39 = vpop.f32.mrf.mxu0 }
  0xc9   :  { %v123_v42 = vadd.f32 %v586_v40, %v122_v39  ;;  %v187_v51 = vmax.f32 %v131_v44, 0.0 }
  0xca   :  { %v660_v41 = vpop.f32.mrf.mxu0 }
  0xcb   :  { %v134_v43 = vadd.f32 %v660_v41, %v586_v40  ;;  %v185_v49 = vmax.f32 %v123_v42, 0.0 }
  0xcc   :  { %v125_v45 = vpop.f32.mrf.mxu0 }
  0xcd   :  { %v126_v46 = vadd.f32 %v586_v40, %v125_v45  ;;  %v188_v47 = vmax.f32 %v134_v43, 0.0 }
  0xce   :  { %v663_v48 = vpop.f32.mrf.mxu0 }
  0xcf   :  { %v186_v50 = vmax.f32 %v126_v46, 0.0  ;;  %v202_v54 = vpack.c.bf16 %v188_v47, %v187_v51  ;;  %v147_v58 = vadd.f32 %v663_v48, %v586_v40 }
  0xd0   :  { %v138_v52 = vpop.f32.mrf.mxu0 }
  0xd1   :  { %v201_v53 = vpack.c.bf16 %v186_v50, %v185_v49  ;;  %v139_v56 = vadd.f32 %v586_v40, %v138_v52  ;;  %v191_v1 = vmax.f32 %v147_v58, 0.0 }
  0xd2   :  { %v664_v55 = vpop.f32.mrf.mxu0 }
  0xd3   :  { %v150_v57 = vadd.f32 %v664_v55, %v586_v40  ;;  %689 = vmatprep.mubr.bf16.mxu1 %v201_v53  ;;  %v189_v63 = vmax.f32 %v139_v56, 0.0 }
  0xd4   :  { %v141_v59 = vpop.f32.mrf.mxu0  ;;  %690 = vmatmul.mubr.bf16.vlgmr.msra.gmra.mxu1 %v202_v54 }
  0xd5   :  { %v142_v60 = vadd.f32 %v586_v40, %v141_v59  ;;  %v192_v61 = vmax.f32 %v150_v57, 0.0 }
  0xd6   :  { %v667_v62 = vpop.f32.mrf.mxu0 }
  0xd7   :  { %v190_v0 = vmax.f32 %v142_v60, 0.0  ;;  %v204_v4 = vpack.c.bf16 %v192_v61, %v191_v1  ;;  %v163_v8 = vadd.f32 %v667_v62, %v586_v40 }
  0xd8   :  { %v154_v2 = vpop.f32.mrf.mxu0 }
  0xd9   :  { %v203_v3 = vpack.c.bf16 %v190_v0, %v189_v63  ;;  %v155_v6 = vadd.f32 %v586_v40, %v154_v2  ;;  %v195_v15 = vmax.f32 %v163_v8, 0.0 }
  0xda   :  { %v668_v5 = vpop.f32.mrf.mxu0 }
  0xdb   :  { %v166_v7 = vadd.f32 %v668_v5, %v586_v40  ;;  %693 = vmatprep.mubr.bf16.mxu1 %v203_v3  ;;  %v193_v13 = vmax.f32 %v155_v6, 0.0 }
  0xdc   :  { %v157_v9 = vpop.f32.mrf.mxu0  ;;  %694 = vmatmul.mubr.bf16.gmra.mxu1 %v204_v4 }
  0xdd   :  { %v158_v10 = vadd.f32 %v586_v40, %v157_v9  ;;  %v196_v11 = vmax.f32 %v166_v7, 0.0 }
  0xde   :  { %v671_v12 = vpop.f32.mrf.mxu0 }
  0xdf   :  { %v194_v14 = vmax.f32 %v158_v10, 0.0  ;;  %v206_v18 = vpack.c.bf16 %v196_v11, %v195_v15  ;;  %v179_v22 = vadd.f32 %v671_v12, %v586_v40 }
  0xe0   :  { %v170_v16 = vpop.f32.mrf.mxu0 }
  0xe1   :  { %v205_v17 = vpack.c.bf16 %v194_v14, %v193_v13  ;;  %v171_v20 = vadd.f32 %v586_v40, %v170_v16  ;;  %v199_v28 = vmax.f32 %v179_v22, 0.0 }
  0xe2   :  { %v672_v19 = vpop.f32.mrf.mxu0 }
  0xe3   :  { %v182_v21 = vadd.f32 %v672_v19, %v586_v40  ;;  %697 = vmatprep.mubr.bf16.mxu1 %v205_v17  ;;  %v197_v26 = vmax.f32 %v171_v20, 0.0 }
  0xe4   :  { %v173_v23 = vpop.f32.mrf.mxu0  ;;  %698 = vmatmul.mubr.bf16.gmra.mxu1 %v206_v18 }
  0xe5   :  { %v174_v24 = vadd.f32 %v586_v40, %v173_v23  ;;  %v200_v25 = vmax.f32 %v182_v21, 0.0 }
  0xe7   :  { %v198_v27 = vmax.f32 %v174_v24, 0.0  ;;  %v208_v30 = vpack.c.bf16 %v200_v25, %v199_v28 }
  0xe9   :  { %v207_v29 = vpack.c.bf16 %v198_v27, %v197_v26  ;;  %v605_v27 = vld [vmem:[%s974_s5] ss:$0 sm:$0xff] }
  0xeb   :  { %701 = vmatprep.mubr.bf16.mxu1 %v207_v29 }
  0xec   :  { %702 = vmatmul.mubr.bf16.gmra.mxu1 %v208_v30 }
 0x194   :  { %v691_v34 = vpop.f32.mrf.mxu1 }
 0x195   :  { %v320_v40 = vadd.f32 %v691_v34, %v596_v36 }
 0x196   :  { %v311_v35 = vpop.f32.mrf.mxu1 }
 0x197   :  { %v312_v38 = vadd.f32 %v596_v36, %v311_v35  ;;  %v376_v47 = vmax.f32 %v320_v40, 0.0 }
 0x198   :  { %v692_v37 = vpop.f32.mrf.mxu1 }
 0x199   :  { %v323_v39 = vadd.f32 %v692_v37, %v596_v36  ;;  %v374_v45 = vmax.f32 %v312_v38, 0.0 }
 0x19a   :  { %v314_v41 = vpop.f32.mrf.mxu1 }
 0x19b   :  { %v315_v42 = vadd.f32 %v596_v36, %v314_v41  ;;  %v377_v43 = vmax.f32 %v323_v39, 0.0 }
 0x19c   :  { %v695_v44 = vpop.f32.mrf.mxu1 }
 0x19d   :  { %v375_v46 = vmax.f32 %v315_v42, 0.0  ;;  %v391_v50 = vpack.c.bf16 %v377_v43, %v376_v47  ;;  %v336_v54 = vadd.f32 %v695_v44, %v596_v36 }
 0x19e   :  { %v327_v48 = vpop.f32.mrf.mxu1 }
 0x19f   :  { %v390_v49 = vpack.c.bf16 %v375_v46, %v374_v45  ;;  %v328_v52 = vadd.f32 %v596_v36, %v327_v48  ;;  %v380_v61 = vmax.f32 %v336_v54, 0.0 }
 0x1a0   :  { %v696_v51 = vpop.f32.mrf.mxu1 }
 0x1a1   :  { %v339_v53 = vadd.f32 %v696_v51, %v596_v36  ;;  %721 = vmatprep.mubr.bf16.mxu0 %v390_v49  ;;  %v378_v59 = vmax.f32 %v328_v52, 0.0 }
 0x1a2   :  { %v330_v55 = vpop.f32.mrf.mxu1  ;;  %722 = vmatmul.mubr.bf16.vlgmr.msra.gmra.mxu0 %v391_v50 }
 0x1a3   :  { %v331_v56 = vadd.f32 %v596_v36, %v330_v55  ;;  %v381_v57 = vmax.f32 %v339_v53, 0.0 }
 0x1a4   :  { %v699_v58 = vpop.f32.mrf.mxu1 }
 0x1a5   :  { %v379_v60 = vmax.f32 %v331_v56, 0.0  ;;  %v393_v0 = vpack.c.bf16 %v381_v57, %v380_v61  ;;  %v352_v4 = vadd.f32 %v699_v58, %v596_v36 }
 0x1a6   :  { %v343_v62 = vpop.f32.mrf.mxu1 }
 0x1a7   :  { %v392_v63 = vpack.c.bf16 %v379_v60, %v378_v59  ;;  %v344_v2 = vadd.f32 %v596_v36, %v343_v62  ;;  %v384_v11 = vmax.f32 %v352_v4, 0.0 }
 0x1a8   :  { %v700_v1 = vpop.f32.mrf.mxu1 }
 0x1a9   :  { %v355_v3 = vadd.f32 %v700_v1, %v596_v36  ;;  %725 = vmatprep.mubr.bf16.mxu0 %v392_v63  ;;  %v382_v9 = vmax.f32 %v344_v2, 0.0 }
 0x1aa   :  { %v346_v5 = vpop.f32.mrf.mxu1  ;;  %726 = vmatmul.mubr.bf16.gmra.mxu0 %v393_v0 }
 0x1ab   :  { %v347_v6 = vadd.f32 %v596_v36, %v346_v5  ;;  %v385_v7 = vmax.f32 %v355_v3, 0.0 }
 0x1ac   :  { %v703_v8 = vpop.f32.mrf.mxu1 }
 0x1ad   :  { %v383_v10 = vmax.f32 %v347_v6, 0.0  ;;  %v395_v14 = vpack.c.bf16 %v385_v7, %v384_v11  ;;  %v368_v18 = vadd.f32 %v703_v8, %v596_v36 }
 0x1ae   :  { %v359_v12 = vpop.f32.mrf.mxu1 }
 0x1af   :  { %v394_v13 = vpack.c.bf16 %v383_v10, %v382_v9  ;;  %v360_v16 = vadd.f32 %v596_v36, %v359_v12  ;;  %v388_v24 = vmax.f32 %v368_v18, 0.0 }
 0x1b0   :  { %v704_v15 = vpop.f32.mrf.mxu1 }
 0x1b1   :  { %v371_v17 = vadd.f32 %v704_v15, %v596_v36  ;;  %729 = vmatprep.mubr.bf16.mxu0 %v394_v13  ;;  %v386_v22 = vmax.f32 %v360_v16, 0.0 }
 0x1b2   :  { %v362_v19 = vpop.f32.mrf.mxu1  ;;  %730 = vmatmul.mubr.bf16.gmra.mxu0 %v395_v14 }
 0x1b3   :  { %v363_v20 = vadd.f32 %v596_v36, %v362_v19  ;;  %v389_v21 = vmax.f32 %v371_v17, 0.0 }
 0x1b5   :  { %v387_v23 = vmax.f32 %v363_v20, 0.0  ;;  %v397_v26 = vpack.c.bf16 %v389_v21, %v388_v24 }
 0x1b7   :  { %v396_v25 = vpack.c.bf16 %v387_v23, %v386_v22 }
 0x1b9   :  { %733 = vmatprep.mubr.bf16.mxu0 %v396_v25 }
 0x1ba   :  { %734 = vmatmul.mubr.bf16.gmra.mxu0 %v397_v26 }
 0x262   :  { %v723_v28 = vpop.f32.mrf.mxu0 }
 0x263   :  { %v511_v29 = vadd.f32 %v723_v28, %v605_v27 }
 0x264   :  { %v502_v30 = vpop.f32.mrf.mxu0 }
 0x265   :  { %568 = vst.msk [vmem:[%s975_s6 + $0x10] sm:$0xff] %vm565_vm1, %v511_v29  ;;  %v503_v31 = vadd.f32 %v605_v27, %v502_v30 }
 0x266   :  { %v724_v32 = vpop.f32.mrf.mxu0 }
 0x267   :  { %566 = vst.msk [vmem:[%s975_s6] sm:$0xff] %vm565_vm1, %v503_v31  ;;  %v514_v33 = vadd.f32 %v724_v32, %v605_v27 }
 0x268   :  { %v505_v34 = vpop.f32.mrf.mxu0 }
 0x269   :  { %569 = vst.msk [vmem:[%s975_s6 + $0x18] sm:$0xff] %vm565_vm1, %v514_v33  ;;  %v506_v35 = vadd.f32 %v605_v27, %v505_v34 }
 0x26a   :  { %v727_v36 = vpop.f32.mrf.mxu0 }
 0x26b   :  { %567 = vst.msk [vmem:[%s975_s6 + $0x8] sm:$0xff] %vm565_vm1, %v506_v35  ;;  %v527_v37 = vadd.f32 %v727_v36, %v605_v27 }
 0x26c   :  { %v518_v38 = vpop.f32.mrf.mxu0 }
 0x26d   :  { %572 = vst.msk [vmem:[%s975_s6 + $0x30] sm:$0xff] %vm565_vm1, %v527_v37  ;;  %v519_v39 = vadd.f32 %v605_v27, %v518_v38 }
 0x26e   :  { %v728_v40 = vpop.f32.mrf.mxu0 }
 0x26f   :  { %570 = vst.msk [vmem:[%s975_s6 + $0x20] sm:$0xff] %vm565_vm1, %v519_v39  ;;  %v530_v41 = vadd.f32 %v728_v40, %v605_v27 }
 0x270   :  { %v521_v42 = vpop.f32.mrf.mxu0 }
 0x271   :  { %573 = vst.msk [vmem:[%s975_s6 + $0x38] sm:$0xff] %vm565_vm1, %v530_v41  ;;  %v522_v43 = vadd.f32 %v605_v27, %v521_v42 }
 0x272   :  { %v731_v44 = vpop.f32.mrf.mxu0 }
 0x273   :  { %571 = vst.msk [vmem:[%s975_s6 + $0x28] sm:$0xff] %vm565_vm1, %v522_v43  ;;  %v543_v45 = vadd.f32 %v731_v44, %v605_v27 }
 0x274   :  { %v534_v46 = vpop.f32.mrf.mxu0 }
 0x275   :  { %576 = vst.msk [vmem:[%s975_s6 + $0x50] sm:$0xff] %vm565_vm1, %v543_v45  ;;  %v535_v47 = vadd.f32 %v605_v27, %v534_v46 }
 0x276   :  { %v732_v48 = vpop.f32.mrf.mxu0 }
 0x277   :  { %574 = vst.msk [vmem:[%s975_s6 + $0x40] sm:$0xff] %vm565_vm1, %v535_v47  ;;  %v546_v49 = vadd.f32 %v732_v48, %v605_v27 }
 0x278   :  { %v537_v50 = vpop.f32.mrf.mxu0 }
 0x279   :  { %577 = vst.msk [vmem:[%s975_s6 + $0x58] sm:$0xff] %vm565_vm1, %v546_v49  ;;  %v538_v51 = vadd.f32 %v605_v27, %v537_v50 }
 0x27a   :  { %v735_v52 = vpop.f32.mrf.mxu0 }
 0x27b   :  { %575 = vst.msk [vmem:[%s975_s6 + $0x48] sm:$0xff] %vm565_vm1, %v538_v51  ;;  %v559_v53 = vadd.f32 %v735_v52, %v605_v27 }
 0x27c   :  { %v550_v54 = vpop.f32.mrf.mxu0 }
 0x27d   :  { %580 = vst.msk [vmem:[%s975_s6 + $0x70] sm:$0xff] %vm565_vm1, %v559_v53  ;;  %v551_v55 = vadd.f32 %v605_v27, %v550_v54 }
 0x27e   :  { %v736_v56 = vpop.f32.mrf.mxu0 }
 0x27f   :  { %578 = vst.msk [vmem:[%s975_s6 + $0x60] sm:$0xff] %vm565_vm1, %v551_v55  ;;  %v562_v57 = vadd.f32 %v736_v56, %v605_v27 }
 0x280   :  { %v553_v58 = vpop.f32.mrf.mxu0 }
 0x281   :  { %581 = vst.msk [vmem:[%s975_s6 + $0x78] sm:$0xff] %vm565_vm1, %v562_v57  ;;  %v554_v59 = vadd.f32 %v605_v27, %v553_v58 }
 0x283   :  { %579 = vst.msk [vmem:[%s975_s6 + $0x68] sm:$0xff] %vm565_vm1, %v554_v59 }

</bundles_post_ra>
